<compile_context>
chip_gen: v7x
topology: tpu7x:2x2x1
jax: 0.10.0
libtpu: 0.0.40
codegen_flags: <defaults>
</compile_context>

<pallas_src>
import functools

import jax
import jax.numpy as jnp
from jax import lax
from jax.experimental import pallas as pl
from jax.experimental.pallas import tpu as pltpu


# ---------------------------------------------------------------------------
# Kernel 1: NodePieceEncoder pooler  (entity table = token_feats @ w_pool)
# ---------------------------------------------------------------------------
def _pooler_kernel(tok_ref, w_ref, ent_ref):
    ent_ref[...] = jnp.dot(tok_ref[...], w_ref[...],
                           preferred_element_type=jnp.float32)


def _pooler(token_feats, w_pool):
    E, AD = token_feats.shape
    D = w_pool.shape[1]
    # Row-tile the entity table; w_pool's block index is constant so its DMA
    # is only performed once (revisited block).  512-row tiles sit near the
    # HBM roofline on v5e/v6e/v7x and fit the scoped VMEM limit easily.
    TE = E if E <= 512 else 512
    return pl.pallas_call(
        _pooler_kernel,
        out_shape=jax.ShapeDtypeStruct((E, D), jnp.float32),
        grid=(pl.cdiv(E, TE),),
        in_specs=[pl.BlockSpec((TE, AD), lambda i: (i, 0)),
                  pl.BlockSpec((AD, D), lambda i: (0, 0))],
        out_specs=pl.BlockSpec((TE, D), lambda i: (i, 0)),
        compiler_params=pltpu.CompilerParams(
            dimension_semantics=("parallel",)),
    )(token_feats, w_pool)


# ---------------------------------------------------------------------------
# Kernel 2: VMEM-resident gather + DistMult scoring (TB batch rows per step)
# ---------------------------------------------------------------------------
def _score_kernel(h_idx, r_idx, t_idx,            # scalar prefetch (SMEM, 1-D)
                  ent_ref, rel_ref,               # VMEM-resident tables
                  out_ref,                        # (TB, n_pad) score block
                  t_rows,                         # VMEM scratch (TB*n_pad, D)
                  *, tb, num_neg, num_neg_pad):
    step = pl.program_id(0)
    b0 = step * tb

    # Zero the lane-padding rows exactly once: the scratch persists across
    # grid steps and the gather loop below never writes rows >= num_neg
    # within each stripe.  (Pad lanes are sliced off by the wrapper anyway.)
    if num_neg < num_neg_pad:
        @pl.when(step == 0)
        def _zero_pad():
            t_rows[...] = jnp.zeros_like(t_rows)

    # ---- Gather the tb * num_neg tail rows from the resident entity table.
    def _gather(n, carry):
        for i in range(tb):                               # static unroll
            row = ent_ref[pl.ds(t_idx[(b0 + i) * num_neg + n], 1), :]
            t_rows[pl.ds(i * num_neg_pad + n, 1), :] = row
        return carry

    lax.fori_loop(0, num_neg, _gather, 0, unroll=num_neg <= 16)

    # ---- DistMult per batch row: q = ent[h] * rel[r]; score = q @ T^T ------
    for i in range(tb):                                   # static unroll
        h_row = ent_ref[pl.ds(h_idx[b0 + i], 1), :]       # (1, D)
        r_row = rel_ref[pl.ds(r_idx[b0 + i], 1), :]       # (1, D)
        q = h_row * r_row                                 # (1, D)
        t_blk = t_rows[pl.ds(i * num_neg_pad, num_neg_pad), :]   # (n_pad, D), static slice
        out_ref[pl.ds(i, 1), :] = lax.dot_general(        # (1, n_pad), lane-dense
            q, t_blk,
            dimension_numbers=(((1,), (1,)), ((), ())),
            preferred_element_type=jnp.float32)


def nodepiece_forward(h_index, t_index, r_index, token_feats, w_pool, rel_emb,
                      *, num_relation):
    B, N = h_index.shape
    D = w_pool.shape[1]
    E = token_feats.shape[0]
    R2 = rel_emb.shape[0]

    # Encoder pooler (hoisted: computed once, not once per scoring step).
    ent = _pooler(token_feats, w_pool)                    # (E, D) f32

    # ---- negative_sample_to_tail, hoisted out of the kernel ---------------
    # The module asserts h_index and r_index are constant along each row
    # after the swap, so a single head / relation index per batch row.
    h_index = h_index.astype(jnp.int32)
    t_index = t_index.astype(jnp.int32)
    r_index = r_index.astype(jnp.int32)
    is_t_neg = jnp.all(h_index == h_index[:, :1], axis=-1)            # (B,)
    new_h = jnp.where(is_t_neg, h_index[:, 0], t_index[:, 0])         # (B,)
    new_t = jnp.where(is_t_neg[:, None], t_index, h_index)            # (B, N)
    new_r = jnp.where(is_t_neg, r_index[:, 0],
                      r_index[:, 0] + num_relation)                   # (B,)

    # ---- batching / padding ------------------------------------------------
    TB = 8 if B >= 8 else B          # >=8 amortizes per-step overhead; demo B=2
    G = pl.cdiv(B, TB)
    B_pad = TB * G
    n_pad = 128 * pl.cdiv(N, 128)    # lane-dense score rows

    pad_b = B_pad - B
    new_h = jnp.pad(new_h, (0, pad_b))                                # (B_pad,)
    new_r = jnp.pad(new_r, (0, pad_b))                                # (B_pad,)
    new_t = jnp.pad(new_t, ((0, pad_b), (0, 0))).reshape(-1)          # (B_pad*N,)

    kernel = functools.partial(_score_kernel, tb=TB, num_neg=N,
                               num_neg_pad=n_pad)

    out = pl.pallas_call(
        kernel,
        out_shape=jax.ShapeDtypeStruct((B_pad, n_pad), jnp.float32),
        grid_spec=pltpu.PrefetchScalarGridSpec(
            num_scalar_prefetch=3,                 # h/r/t index tables -> SMEM
            grid=(G,),                             # TB batch rows per step
            in_specs=[
                # Entity table resident in VMEM (constant block index ->
                # DMA'd once, revisited across all grid steps).
                pl.BlockSpec((E, D), lambda g, h, r, t: (0, 0)),
                # Relation table resident in VMEM (tiny: 2*num_relation*D*4 B).
                pl.BlockSpec((R2, D), lambda g, h, r, t: (0, 0)),
            ],
            out_specs=pl.BlockSpec((TB, n_pad), lambda g, h, r, t: (g, 0)),
            scratch_shapes=[
                pltpu.VMEM((TB * n_pad, D), jnp.float32),   # gathered tail rows
            ]),
        compiler_params=pltpu.CompilerParams(
            dimension_semantics=("parallel",),      # batch blocks over v7x TCs
            vmem_limit_bytes=48 * 1024 * 1024),     # < v7x 64 MiB physical
    )(new_h, new_r, new_t, ent, rel_emb.astype(jnp.float32))

    return out[:B, :N]


def nodepiece_reference(h_index, t_index, r_index, token_feats, w_pool,
                        rel_emb, *, num_relation):
    ent = token_feats @ w_pool
    is_t_neg = jnp.all(h_index == h_index[:, 0:1], axis=-1, keepdims=True)
    new_h = jnp.where(is_t_neg, h_index, t_index)
    new_t = jnp.where(is_t_neg, t_index, h_index)
    new_r = jnp.where(is_t_neg, r_index, r_index + num_relation)
    hv = ent[new_h]
    tv = ent[new_t]
    rv = rel_emb[new_r]
    return jnp.sum(hv * rv * tv, axis=-1)


if __name__ == "__main__":
    # Small shapes implied by the module:
    #   input_dim D=64, ancs_per_node A=4 ("cat" pooler concat width A*D=256),
    #   num_entity E=32, num_relation=8 (use_inverses -> 16 relation rows),
    #   batch B=2, negatives+1 N=8.
    B, N = 2, 8
    E, D, A = 32, 64, 4
    NUM_RELATION = 8
    R2 = 2 * NUM_RELATION

    key = jax.random.PRNGKey(0)
    k_tok, k_pool, k_rel = jax.random.split(key, 3)

    token_feats = jax.random.normal(k_tok, (E, A * D), dtype=jnp.float32) * 0.1
    w_pool = jax.random.normal(k_pool, (A * D, D), dtype=jnp.float32) * 0.05
    rel_emb = jax.random.normal(k_rel, (R2, D), dtype=jnp.float32) * 0.1

    # Row 0: tail negatives (h constant, t varies).
    # Row 1: head negatives (t constant, h varies) -> exercises the swap path.
    h_index = jnp.array(
        [[3] * N, [7, 1, 2, 9, 11, 4, 6, 0]], dtype=jnp.int32)
    t_index = jnp.array(
        [[5, 8, 1, 30, 12, 2, 17, 9], [5] * N], dtype=jnp.int32)
    r_index = jnp.array([[2] * N, [6] * N], dtype=jnp.int32)

    score = nodepiece_forward(h_index, t_index, r_index, token_feats, w_pool,
                              rel_emb, num_relation=NUM_RELATION)
    score = jax.block_until_ready(score)

    ref = nodepiece_reference(h_index, t_index, r_index, token_feats, w_pool,
                              rel_emb, num_relation=NUM_RELATION)
    assert score.shape == (B, N)
    # Small slack for MXU f32 multi-pass vs XLA dot rounding differences.
    assert jnp.allclose(score, ref, atol=2e-4, rtol=2e-4), (score, ref)

    print("KERNEL_OK")
</pallas_src>

<mosaic_0001>
module attributes {stable_mosaic.version = 11 : i64} {
  func.func @_pooler_kernel(%arg0: i32, %arg1: memref<32x256xf32, #tpu.memory_space<vmem>>, %arg2: memref<256x64xf32, #tpu.memory_space<vmem>>, %arg3: memref<32x64xf32, #tpu.memory_space<vmem>>) attributes {dimension_semantics = [#tpu.dimension_semantics<parallel>], iteration_bounds = array<i64: 1>, scalar_prefetch = 0 : i64, scratch_operands = 0 : i64, tpu.core_type = #tpu.core_type<tc>, window_params = [{transform_indices = @transform_0, window_bounds = array<i64: 32, 256>}, {pipeline_mode = #tpu.pipeline_mode<synchronous>, transform_indices = @transform_1, window_bounds = array<i64: 256, 64>}, {transform_indices = @transform_2, window_bounds = array<i64: 32, 64>}]} {
    %c0 = arith.constant 0 : index
    %c0_0 = arith.constant 0 : index
    %0 = vector.load %arg1[%c0, %c0_0] : memref<32x256xf32, #tpu.memory_space<vmem>>, vector<32x256xf32>
    %c0_1 = arith.constant 0 : index
    %c0_2 = arith.constant 0 : index
    %1 = vector.load %arg2[%c0_1, %c0_2] : memref<256x64xf32, #tpu.memory_space<vmem>>, vector<256x64xf32>
    %cst = arith.constant dense<0.000000e+00> : vector<32x64xf32>
    %2 = tpu.matmul %0, %1, %cst {dimension_numbers = #tpu.dot_dimension_numbers<[1], [0], [0], [1], [0, 0, 1, 1], [], []>} : vector<32x256xf32>, vector<256x64xf32>, vector<32x64xf32> -> vector<32x64xf32>
    %c0_3 = arith.constant 0 : index
    %c0_4 = arith.constant 0 : index
    %3 = vector.load %arg3[%c0_3, %c0_4] : memref<32x64xf32, #tpu.memory_space<vmem>>, vector<32x64xf32>
    tpu.vector_store %arg3[%c0_3, %c0_4], %2 {strides = array<i32>} : memref<32x64xf32, #tpu.memory_space<vmem>>, vector<32x64xf32>,
    return
  }
  func.func @transform_0(%arg0: i32) -> (i32, i32) {
    %c0_i32 = arith.constant 0 : i32
    %c0_i32_0 = arith.constant 0 : i32
    return %arg0, %c0_i32 : i32, i32
  }
  func.func @transform_1(%arg0: i32) -> (i32, i32) {
    %c0_i32 = arith.constant 0 : i32
    %c0_i32_0 = arith.constant 0 : i32
    %c0_i32_1 = arith.constant 0 : i32
    return %c0_i32, %c0_i32_0 : i32, i32
  }
  func.func @transform_2(%arg0: i32) -> (i32, i32) {
    %c0_i32 = arith.constant 0 : i32
    %c0_i32_0 = arith.constant 0 : i32
    return %arg0, %c0_i32 : i32, i32
  }
}

</mosaic_0001>

<bundles_post_ra>
// kernel: tpu_custom_call.1
= control target key start
LH: loop header
LB: loop body
LE: loop exit
PB: predicated region body
PF: predicated region fallthrough
CT: control target
= control target key end

     0   :  { %s431_s0 = inlined_call_operand.vmem [shape: f32[32,256], index: 0, kind: input, shape index: {}]   ;;  %s432_s1 = inlined_call_operand.vmem [shape: f32[256,64], index: 1, kind: input, shape index: {}]   ;;  %s433_s2 = inlined_call_operand.hbm [shape: f32[32,64], index: 2, kind: output, shape index: {}]  }
   0x1   :  { %v36_v0 = vld [vmem:[%s432_s1 + $0x80] sm:$0xff]  ;;  %v37_v1 = vld [vmem:[%s432_s1 + $0x88] sm:$0xff]  ;;  %v38_v5 = vld [vmem:[%s432_s1 + $0x90] sm:$0xff] }
   0x2   :  { %v20_v2 = vld [vmem:[%s432_s1] sm:$0xff]  ;;  %v202_v3 = vpack.c.bf16 %v37_v1, %v36_v0  ;;  %v21_v4 = vld [vmem:[%s432_s1 + $0x8] sm:$0xff]  ;;  %v39_v6 = vld [vmem:[%s432_s1 + $0x98] sm:$0xff] }
   0x3   :  { %v204_v7 = vpack.c.bf16 %v21_v4, %v20_v2  ;;  %v206_v8 = vpack.c.bf16 %v39_v6, %v38_v5  ;;  %v22_v9 = vld [vmem:[%s432_s1 + $0x10] sm:$0xff]  ;;  %v23_v10 = vld [vmem:[%s432_s1 + $0x18] sm:$0xff]  ;;  %v40_v11 = vld [vmem:[%s432_s1 + $0xa0] sm:$0xff] }
   0x4   :  { %203 = vmatprep.subr.bf16.mxu0 %v202_v3  ;;  %234 = vmatprep.subr.bf16.mxu1 %v202_v3  ;;  %v41_v12 = vld [vmem:[%s432_s1 + $0xa8] sm:$0xff]  ;;  %v208_v13 = vpack.c.bf16 %v23_v10, %v22_v9  ;;  %v24_v15 = vld [vmem:[%s432_s1 + $0x20] sm:$0xff]  ;;  %v42_v17 = vld [vmem:[%s432_s1 + $0xb0] sm:$0xff] }
   0x5   :  { %205 = vmatpush3.bf16.msra.mxu0 %v204_v7  ;;  %242 = vmatpush3.bf16.msra.mxu1 %v204_v7  ;;  %v210_v14 = vpack.c.bf16 %v41_v12, %v40_v11  ;;  %v25_v16 = vld [vmem:[%s432_s1 + $0x28] sm:$0xff]  ;;  %v43_v18 = vld [vmem:[%s432_s1 + $0xb8] sm:$0xff]  ;;  %v26_v21 = vld [vmem:[%s432_s1 + $0x30] sm:$0xff] }
   0x6   :  { %207 = vmatprep.subr.bf16.mxu0 %v206_v8  ;;  %235 = vmatprep.subr.bf16.mxu1 %v206_v8  ;;  %v212_v19 = vpack.c.bf16 %v25_v16, %v24_v15  ;;  %v214_v20 = vpack.c.bf16 %v43_v18, %v42_v17  ;;  %v27_v22 = vld [vmem:[%s432_s1 + $0x38] sm:$0xff]  ;;  %v44_v23 = vld [vmem:[%s432_s1 + $0xc0] sm:$0xff]  ;;  %v45_v24 = vld [vmem:[%s432_s1 + $0xc8] sm:$0xff] }
   0x7   :  { %v13_v25 = vld [vmem:[%s431_s0 + $0x8] sm:$0xff]  ;;  %v216_v27 = vpack.c.bf16 %v27_v22, %v26_v21  ;;  %v218_v28 = vpack.c.bf16 %v45_v24, %v44_v23  ;;  %v28_v29 = vld [vmem:[%s432_s1 + $0x40] sm:$0xff] }
   0x8   :  { %116 = vmatprep.mubr.f32.mxu0 %v13_v25  ;;  %v17_v26 = vld [vmem:[%s431_s0 + $0x28] sm:$0xff] }
   0x9   :  { %209 = vmatpush3.bf16.msra.mxu0 %v208_v13  ;;  %243 = vmatpush3.bf16.msra.mxu1 %v208_v13  ;;  %v29_v30 = vld [vmem:[%s432_s1 + $0x48] sm:$0xff] }
   0xa   :  { %211 = vmatprep.subr.bf16.mxu0 %v210_v14  ;;  %236 = vmatprep.subr.bf16.mxu1 %v210_v14 }
   0xd   :  { %213 = vmatpush3.bf16.msra.mxu0 %v212_v19  ;;  %244 = vmatpush3.bf16.msra.mxu1 %v212_v19 }
   0xe   :  { %215 = vmatprep.subr.bf16.mxu0 %v214_v20  ;;  %237 = vmatprep.subr.bf16.mxu1 %v214_v20 }
   0xf   :  { %7 = vsyncpa [#allocation3], 0  ;;  %v46_v31 = vld [vmem:[%s432_s1 + $0xd0] sm:$0xff]  ;;  %v47_v32 = vld [vmem:[%s432_s1 + $0xd8] sm:$0xff]  ;;  %126 = vmatprep.mubr.f32.mxu1 %v17_v26  ;;  %v220_v33 = vpack.c.bf16 %v29_v30, %v28_v29  ;;  %vm137_vm0 = vcmask 523264   ;;  %s277_s4 = smov [#allocation2]  }
  0x10   :  { %v222_v34 = vpack.c.bf16 %v47_v32, %v46_v31  ;;  %v30_v35 = vld [vmem:[%s432_s1 + $0x50] sm:$0xff]  ;;  %v31_v36 = vld [vmem:[%s432_s1 + $0x58] sm:$0xff]  ;;  %v48_v37 = vld [vmem:[%s432_s1 + $0xe0] sm:$0xff]  ;;  %s147_s5 = sshll.u32 %s277_s4, 4  ;;  %s148_s5 = int_to_ptr.vmem [resolvable:$true] %s147_s5 }
  0x11   :  { %217 = vmatpush3.bf16.msra.mxu0 %v216_v27  ;;  %245 = vmatpush3.bf16.msra.mxu1 %v216_v27  ;;  %v49_v38 = vld [vmem:[%s432_s1 + $0xe8] sm:$0xff]  ;;  %v224_v39 = vpack.c.bf16 %v31_v36, %v30_v35  ;;  %v32_v41 = vld [vmem:[%s432_s1 + $0x60] sm:$0xff]  ;;  %v50_v43 = vld [vmem:[%s432_s1 + $0xf0] sm:$0xff]  ;;  %p258_p1 = scmp.lt.s32.totalorder %s148_s5, %s148_s5 }
  0x12   :  { %219 = vmatprep.subr.bf16.mxu0 %v218_v28  ;;  %238 = vmatprep.subr.bf16.mxu1 %v218_v28  ;;  %v226_v40 = vpack.c.bf16 %v49_v38, %v48_v37  ;;  %v33_v42 = vld [vmem:[%s432_s1 + $0x68] sm:$0xff]  ;;  %v51_v44 = vld [vmem:[%s432_s1 + $0xf8] sm:$0xff]  ;;  %v34_v47 = vld [vmem:[%s432_s1 + $0x70] sm:$0xff] }
  0x13   :  { %v228_v45 = vpack.c.bf16 %v33_v42, %v32_v41  ;;  %v230_v46 = vpack.c.bf16 %v51_v44, %v50_v43  ;;  %v35_v48 = vld [vmem:[%s432_s1 + $0x78] sm:$0xff]  ;;  %v12_v50 = vld [vmem:[%s431_s0] sm:$0xff]  ;;  %v14_v54 = vld [vmem:[%s431_s0 + $0x10] sm:$0xff] }
  0x14   :  { %v232_v49 = vpack.c.bf16 %v35_v48, %v34_v47  ;;  %v16_v51 = vld [vmem:[%s431_s0 + $0x20] sm:$0xff]  ;;  %v15_v52 = vld [vmem:[%s431_s0 + $0x18] sm:$0xff]  ;;  %v18_v55 = vld [vmem:[%s431_s0 + $0x30] sm:$0xff] }
  0x15   :  { %221 = vmatpush3.bf16.msra.mxu0 %v220_v33  ;;  %246 = vmatpush3.bf16.msra.mxu1 %v220_v33  ;;  %v19_v53 = vld [vmem:[%s431_s0 + $0x38] sm:$0xff]  ;;  %s253_s0 = scalar_lea.vmem %s148_s5, 512 }
  0x16   :  { %223 = vmatprep.subr.bf16.mxu0 %v222_v34  ;;  %239 = vmatprep.subr.bf16.mxu1 %v222_v34  ;;  %p254_p0 = scmp.ne.s32.totalorder %s148_s5, %s253_s0  ;;  %p259_p2 = scmp.lt.s32.totalorder %s253_s0, %s253_s0 }
  0x18   :  { %p260_p3 = por %p259_p2, %p258_p1 }
  0x19   :  { %225 = vmatpush3.bf16.msra.mxu0 %v224_v39  ;;  %247 = vmatpush3.bf16.msra.mxu1 %v224_v39 }
  0x1a   :  { %227 = vmatprep.subr.bf16.mxu0 %v226_v40  ;;  %240 = vmatprep.subr.bf16.mxu1 %v226_v40  ;;  %p261_p4 = pnand %p260_p3, %p254_p0 }
  0x1d   :  { %229 = vmatpush3.bf16.msra.mxu0 %v228_v45  ;;  %248 = vmatpush3.bf16.msra.mxu1 %v228_v45 }
  0x1e   :  { %231 = vmatprep.subr.bf16.mxu0 %v230_v46  ;;  %241 = vmatprep.subr.bf16.mxu1 %v230_v46 }
  0x21   :  { %233 = vmatpush3.bf16.msra.mxu0 %v232_v49  ;;  %249 = vmatpush3.bf16.msra.mxu1 %v232_v49 }
  0x24   :  { %117 = vmatmul.mubr.f32.vlgmr.msra.gmra.mrb[0].mxu0 %v12_v50  ;;  %127 = vmatmul.mubr.f32.vlgmr.msra.gmra.mrb[0].mxu1 %v16_v51 }
  0x25   :  { %121 = vmatprep.mubr.f32.mxu0 %v15_v52  ;;  %131 = vmatprep.mubr.f32.mxu1 %v19_v53 }
  0x28   :  { %122 = vmatmul.mubr.f32.gmra.mrb[2].mxu0 %v14_v54  ;;  %132 = vmatmul.mubr.f32.gmra.mrb[2].mxu1 %v18_v55 }
  0xf7   :  { %v190_v56 = vpop.f32.mrb[0].mxu0  ;;  %v196_v57 = vpop.f32.mrb[0].mxu1 }
  0xf8   :  { %v191_v58 = vpop.f32.mrb[1].mxu0  ;;  %v197_v59 = vpop.f32.mrb[1].mxu1 }
  0xf9   :  { %v192_v60 = vadd.f32 %v191_v58, %v190_v56  ;;  %v198_v61 = vadd.f32 %v197_v59, %v196_v57 }
  0xfb   :  { %138 = vst.msk [vmem:[#allocation2] sm:$0xff] %vm137_vm0, %v192_v60  ;;  %140 = vst.msk [vmem:[#allocation2 + $0x10] sm:$0xff] %vm137_vm0, %v198_v61  ;;  %v193_v62 = vpop.f32.mrb[2].mxu0  ;;  %v199_v63 = vpop.f32.mrb[2].mxu1 }
  0xfc   :  { %v194_v0 = vpop.f32.mrb[3].mxu0  ;;  %v200_v1 = vpop.f32.mrb[3].mxu1 }
  0xfd   :  { %v195_v2 = vadd.f32 %v194_v0, %v193_v62  ;;  %v201_v3 = vadd.f32 %v200_v1, %v199_v63 }
  0xff   :  { %139 = vst.msk [vmem:[#allocation2 + $0x8] sm:$0xff] %vm137_vm0, %v195_v2  ;;  %141 = vst.msk [vmem:[#allocation2 + $0x18] sm:$0xff] %vm137_vm0, %v201_v3 }
 0x100   :  { %264 = shalt.err (!%p261_p4)
}
 0x101   :  { %s265_s8 = scalar_lea.hbm %s433_s2, 512 }
 0x102   :  { %p266_p5 = scmp.ne.s32.totalorder %s433_s2, %s265_s8  ;;  %p269_p6 = scmp.lt.u32.totalorder %s265_s8, %s433_s2 }
 0x104   :  { %p271_p7 = pnand %p269_p6, %p266_p5 }
 0x106   :  { %274 = shalt.err (!%p271_p7)
}
 0x107   :  { %s278_s13 = smov 128   ;;  %s279_s14 = smov 8  }
 0x108   :  { %153 = dma.vmem_to_hbm [thread:$0]  %s148_s5, 512, %s433_s2, [#allocation3], %s278_s13, %s278_s13, %s279_s14  }
 0x109   :  { %275 = dma.done.wait [#allocation3], 512  }
 0x10a   :  { %276 = vsyncadd [#allocation3], 4294966784 }
 0x10b   :  { %157 = vsyncpa [#allocation3], 1 }

</bundles_post_ra>
